<compile_context>
chip_gen: v6e
topology: v6e:2x2x1
jax: 0.10.0
libtpu: 0.0.40
codegen_flags: <defaults>
</compile_context>

<pallas_src>
import jax
import jax.numpy as jnp
from jax.experimental import pallas as pl
from jax.experimental.pallas import tpu as pltpu

B, C_IN, L = 2, 4, 16     # batch, input channels (one-hot DNA), sequence length
H = 32                    # hidden channels
K = 3                     # conv kernel size
PAD = K // 2              # 'same' padding
N = B * L                 # batch-folded row count (row r = l*B + b)
NP = N + 2 * B            # edge-padded row count (B zero rows each end)
OUT_ROWS = 8              # lane-dense output slab sublane count (>= B)
LANES = 128
W2_OFF = 16               # w2 taps start in the weight slab (16-row aligned for bf16)
WSLAB_ROWS = W2_OFF + K * H   # 112


def prixfixe_kernel(xim_ref, w_ref, b_ref, f_ref, o_ref, h1p_ref):
    """Fused first/core/final forward over all batch elements at once.

    xim_ref : (NP, K*C_IN) bf16  im2col'ed, edge-padded, batch-folded input
    w_ref   : (112, H)     bf16  rows 0:12 = w1 im2col (K*C_IN, H),
                                 rows 16+k*H : 16+(k+1)*H = w2 tap k
    b_ref   : (2, H)       f32   row 0 = b1, row 1 = b2
    f_ref   : (H+1, 128)   bf16  rows 0:H = w3 zero-padded to 128 lanes, row H = b3
    o_ref   : (8, 128)     f32   row b, col 0 holds y[b]; rows >= B hold only b3
    h1p_ref : (NP, H)      f32   scratch: edge-zero-padded first-layer activations
    """
    # ---- First block: Conv1d(C_IN->H, k=3, 'same') + ReLU -----------------
    # Single im2col bf16 MXU matmul over all taps and all batch elements.
    b1 = b_ref[0:1, :]
    h1 = jnp.dot(xim_ref[...], w_ref[0:K * C_IN, :],
                 preferred_element_type=jnp.float32) + b1            # (NP, H) f32
    h1 = jnp.maximum(h1, 0.0)
    # Zero the B edge rows at each end: they become the core conv's 'same'
    # zero padding (their im2col windows held out-of-range data + bias).
    row = jax.lax.broadcasted_iota(jnp.int32, (NP, H), 0)
    h1p_ref[...] = jnp.where((row >= B) & (row < B + N), h1, 0.0)    # aligned full store

    # ---- Core block: Conv1d(H->H, k=3, 'same') + ReLU ----------------------
    # Shifted window loads from the padded scratch (no shift-matrix matmuls);
    # 3 small bf16 matmuls accumulated in f32, seeded by the first tap.
    b2 = b_ref[1:2, :]
    acc2 = None
    for k in range(K):                                               # K=3, static unroll
        hk = h1p_ref[k * B:k * B + N, :].astype(jnp.bfloat16)        # (N, H)
        wk = w_ref[W2_OFF + k * H:W2_OFF + (k + 1) * H, :]           # (H, H), 16-row aligned
        t = jnp.dot(hk, wk, preferred_element_type=jnp.float32)
        acc2 = t if k == 0 else acc2 + t
    h2 = jnp.maximum(acc2 + b2, 0.0).astype(jnp.bfloat16)            # (N, H) bf16

    # ---- Final block: per-batch mean pool over seq + Linear(H -> 1) --------
    # Pool matrix rebuilt in-kernel from iotas (entries 0 / 1/L, exact in
    # bf16) -> no DMA for it.  Rows >= B of pool are all-zero, so output rows
    # >= B only carry the broadcast b3 bias (sliced off by the wrapper).
    rows = jax.lax.broadcasted_iota(jnp.int32, (OUT_ROWS, N), 0)
    cols = jax.lax.broadcasted_iota(jnp.int32, (OUT_ROWS, N), 1)
    pool = jnp.where(cols % B == rows, 1.0 / L, 0.0).astype(jnp.bfloat16)
    pooled = jnp.dot(pool, h2, preferred_element_type=jnp.float32)   # (8, H) f32
    o_ref[...] = (jnp.dot(pooled.astype(jnp.bfloat16), f_ref[0:H, :],
                          preferred_element_type=jnp.float32)
                  + f_ref[H:H + 1, :].astype(jnp.float32))


def init_params(key):
    """Synthetic parameters (PyTorch Conv1d weight (out,in,k) is stored
    taps-first as (k, in, out) to match the channels-last matmul form)."""
    k1, k2, k3, k4, k5, k6 = jax.random.split(key, 6)
    w1 = jax.random.normal(k1, (K, C_IN, H), jnp.float32) / jnp.sqrt(C_IN * K)
    b1 = jax.random.normal(k2, (1, H), jnp.float32) * 0.01
    w2 = jax.random.normal(k3, (K, H, H), jnp.float32) / jnp.sqrt(H * K)
    b2 = jax.random.normal(k4, (1, H), jnp.float32) * 0.01
    w3 = jax.random.normal(k5, (H, 1), jnp.float32) / jnp.sqrt(H)
    b3 = jax.random.normal(k6, (1, 1), jnp.float32) * 0.01
    return w1, b1, w2, b2, w3, b3


def pack_inputs(params):
    """One-time packing of parameters into the kernel's input slabs."""
    assert B <= OUT_ROWS
    w1, b1, w2, b2, w3, b3 = params

    # Conv-weight slab (bf16): w1 as one im2col matrix at rows 0:K*C_IN,
    # w2 taps at 16-row-aligned offsets so every in-kernel slice is a
    # tile-aligned bf16 load.
    w1_flat = jnp.pad(w1.reshape(K * C_IN, H), ((0, W2_OFF - K * C_IN), (0, 0)))
    w2_flat = w2.reshape(K * H, H)
    wslab = jnp.concatenate([w1_flat, w2_flat], axis=0).astype(jnp.bfloat16)  # (112, H)

    bslab = jnp.concatenate([b1, b2], axis=0)                                 # (2, H) f32

    # Final-linear slab (bf16), lane-dense 128 wide: rows 0:H = w3, row H = b3.
    fslab = jnp.concatenate(
        [jnp.pad(w3, ((0, 0), (0, LANES - w3.shape[1]))),
         jnp.pad(b3, ((0, 0), (0, LANES - b3.shape[1])))],
        axis=0).astype(jnp.bfloat16)                                          # (H+1, 128)

    return wslab, bslab, fslab


@jax.jit
def prixfixe_forward(x_ncw, packed):
    """x_ncw: (B, C_IN, L) float32, PyTorch NCW convention."""
    wslab, bslab, fslab = packed

    # Batch-folded, channels-last, edge-padded im2col slab: row s corresponds
    # to padded position (row r = l*B + b at s = r + B); window k sits in
    # cols k*C_IN:(k+1)*C_IN.  Cast to bf16 so the first-conv MXU operand
    # needs no in-kernel cast and the input DMA bytes halve.
    # TODO(synk): this relayout is a small fused XLA prep op; folding it into
    # the kernel needs an in-kernel (C, L) transpose, not worth it at this size.
    xf = jnp.transpose(x_ncw, (2, 0, 1)).reshape(N, C_IN)
    xpe = jnp.pad(xf, ((2 * B, 2 * B), (0, 0)))                      # (N + 4B, C_IN)
    xim = jnp.concatenate([xpe[k * B:k * B + NP, :] for k in range(K)],
                          axis=1).astype(jnp.bfloat16)               # (NP, K*C_IN)

    out = pl.pallas_call(
        prixfixe_kernel,
        out_shape=jax.ShapeDtypeStruct((OUT_ROWS, LANES), jnp.float32),
        in_specs=[pl.BlockSpec(memory_space=pltpu.MemorySpace.VMEM)] * 4,
        out_specs=pl.BlockSpec(memory_space=pltpu.MemorySpace.VMEM),
        scratch_shapes=[pltpu.VMEM((NP, H), jnp.float32)],
    )(xim, wslab, bslab, fslab)

    return out[:x_ncw.shape[0], :1]              # (B, 1); rest of slab is padding/bias


def reference(x_ncw, params):
    """Pure-JAX f32 reference implementing the same forward semantics."""
    w1, b1, w2, b2, w3, b3 = params
    x = jnp.transpose(x_ncw, (0, 2, 1))
    xp = jnp.pad(x, ((0, 0), (PAD, PAD), (0, 0)))
    h1 = sum(jnp.dot(xp[:, k:k + L, :], w1[k],
                     preferred_element_type=jnp.float32) for k in range(K)) + b1
    h1 = jnp.maximum(h1, 0.0)
    h1p = jnp.pad(h1, ((0, 0), (PAD, PAD), (0, 0)))
    h2 = sum(jnp.dot(h1p[:, k:k + L, :], w2[k],
                     preferred_element_type=jnp.float32) for k in range(K)) + b2
    h2 = jnp.maximum(h2, 0.0)
    pooled = h2.mean(axis=1)
    return jnp.dot(pooled, w3, preferred_element_type=jnp.float32) + b3


if __name__ == "__main__":
    key = jax.random.PRNGKey(0)
    kx, kp = jax.random.split(key)
    x = jax.random.normal(kx, (B, C_IN, L), jnp.float32)   # (batch, channel, seq)
    params = init_params(kp)
    packed = pack_inputs(params)

    y = prixfixe_forward(x, packed)
    jax.block_until_ready(y)

    y_ref = reference(x, params)
    assert y.shape == (B, 1)
    # Tolerance covers the bf16 rounding of MXU operands (input, conv taps,
    # h2, pool, w3, b3); all accumulation stays f32.  Reference is pure f32.
    assert jnp.allclose(y, y_ref, atol=3e-2, rtol=3e-2), (y, y_ref)
    print("KERNEL_OK")
</pallas_src>

<mosaic_0001>
module attributes {stable_mosaic.version = 11 : i64} {
  func.func @prixfixe_kernel(%arg0: memref<36x12xbf16, #tpu.memory_space<vmem>>, %arg1: memref<112x32xbf16, #tpu.memory_space<vmem>>, %arg2: memref<2x32xf32, #tpu.memory_space<vmem>>, %arg3: memref<33x128xbf16, #tpu.memory_space<vmem>>, %arg4: memref<8x128xf32, #tpu.memory_space<vmem>>, %arg5: memref<36x32xf32, #tpu.memory_space<vmem>>) attributes {dimension_semantics = [], scalar_prefetch = 0 : i64, scratch_operands = 1 : i64, tpu.core_type = #tpu.core_type<tc>} {
    %c0 = arith.constant 0 : index
    %c0_0 = arith.constant 0 : index
    %0 = vector.load %arg2[%c0, %c0_0] : memref<2x32xf32, #tpu.memory_space<vmem>>, vector<1x32xf32>
    %c0_1 = arith.constant 0 : index
    %c0_2 = arith.constant 0 : index
    %1 = vector.load %arg0[%c0_1, %c0_2] : memref<36x12xbf16, #tpu.memory_space<vmem>>, vector<36x12xbf16>
    %c0_3 = arith.constant 0 : index
    %c0_4 = arith.constant 0 : index
    %2 = vector.load %arg1[%c0_3, %c0_4] : memref<112x32xbf16, #tpu.memory_space<vmem>>, vector<12x32xbf16>
    %cst = arith.constant dense<0.000000e+00> : vector<36x32xf32>
    %3 = tpu.matmul %1, %2, %cst {dimension_numbers = #tpu.dot_dimension_numbers<[1], [0], [0], [1], [0, 0, 1, 1], [], []>} : vector<36x12xbf16>, vector<12x32xbf16>, vector<36x32xf32> -> vector<36x32xf32>
    %4 = vector.broadcast %0 : vector<1x32xf32> to vector<36x32xf32>
    %5 = arith.addf %3, %4 : vector<36x32xf32>
    %cst_5 = arith.constant 0.000000e+00 : f32
    %6 = vector.broadcast %cst_5 : f32 to vector<36x32xf32>
    %7 = arith.maximumf %5, %6 : vector<36x32xf32>
    %8 = tpu.iota {dimensions = array<i32: 0>} : vector<36x32xi32>
    %c2_i32 = arith.constant 2 : i32
    %9 = vector.broadcast %c2_i32 : i32 to vector<36x32xi32>
    %10 = arith.cmpi sge, %8, %9 : vector<36x32xi32>
    %c34_i32 = arith.constant 34 : i32
    %11 = vector.broadcast %c34_i32 : i32 to vector<36x32xi32>
    %12 = arith.cmpi slt, %8, %11 : vector<36x32xi32>
    %13 = arith.andi %10, %12 : vector<36x32xi1>
    %cst_6 = arith.constant 0.000000e+00 : f32
    %14 = vector.broadcast %cst_6 : f32 to vector<36x32xf32>
    %15 = arith.select %13, %7, %14 : vector<36x32xi1>, vector<36x32xf32>
    %c0_7 = arith.constant 0 : index
    %c0_8 = arith.constant 0 : index
    %16 = vector.load %arg5[%c0_7, %c0_8] : memref<36x32xf32, #tpu.memory_space<vmem>>, vector<36x32xf32>
    tpu.vector_store %arg5[%c0_7, %c0_8], %15 {strides = array<i32>} : memref<36x32xf32, #tpu.memory_space<vmem>>, vector<36x32xf32>,
    %c1 = arith.constant 1 : index
    %c0_9 = arith.constant 0 : index
    %17 = vector.load %arg2[%c1, %c0_9] : memref<2x32xf32, #tpu.memory_space<vmem>>, vector<1x32xf32>
    %c0_10 = arith.constant 0 : index
    %c0_11 = arith.constant 0 : index
    %18 = vector.load %arg5[%c0_10, %c0_11] : memref<36x32xf32, #tpu.memory_space<vmem>>, vector<32x32xf32>
    %19 = arith.truncf %18 : vector<32x32xf32> to vector<32x32xbf16>
    %c16 = arith.constant 16 : index
    %c0_12 = arith.constant 0 : index
    %20 = vector.load %arg1[%c16, %c0_12] : memref<112x32xbf16, #tpu.memory_space<vmem>>, vector<32x32xbf16>
    %cst_13 = arith.constant dense<0.000000e+00> : vector<32x32xf32>
    %21 = tpu.matmul %19, %20, %cst_13 {dimension_numbers = #tpu.dot_dimension_numbers<[1], [0], [0], [1], [0, 0, 1, 1], [], []>} : vector<32x32xbf16>, vector<32x32xbf16>, vector<32x32xf32> -> vector<32x32xf32>
    %c2 = arith.constant 2 : index
    %c0_14 = arith.constant 0 : index
    %22 = vector.load %arg5[%c2, %c0_14] : memref<36x32xf32, #tpu.memory_space<vmem>>, vector<32x32xf32>
    %23 = arith.truncf %22 : vector<32x32xf32> to vector<32x32xbf16>
    %c48 = arith.constant 48 : index
    %c0_15 = arith.constant 0 : index
    %24 = vector.load %arg1[%c48, %c0_15] : memref<112x32xbf16, #tpu.memory_space<vmem>>, vector<32x32xbf16>
    %cst_16 = arith.constant dense<0.000000e+00> : vector<32x32xf32>
    %25 = tpu.matmul %23, %24, %cst_16 {dimension_numbers = #tpu.dot_dimension_numbers<[1], [0], [0], [1], [0, 0, 1, 1], [], []>} : vector<32x32xbf16>, vector<32x32xbf16>, vector<32x32xf32> -> vector<32x32xf32>
    %26 = arith.addf %21, %25 : vector<32x32xf32>
    %c4 = arith.constant 4 : index
    %c0_17 = arith.constant 0 : index
    %27 = vector.load %arg5[%c4, %c0_17] : memref<36x32xf32, #tpu.memory_space<vmem>>, vector<32x32xf32>
    %28 = arith.truncf %27 : vector<32x32xf32> to vector<32x32xbf16>
    %c80 = arith.constant 80 : index
    %c0_18 = arith.constant 0 : index
    %29 = vector.load %arg1[%c80, %c0_18] : memref<112x32xbf16, #tpu.memory_space<vmem>>, vector<32x32xbf16>
    %cst_19 = arith.constant dense<0.000000e+00> : vector<32x32xf32>
    %30 = tpu.matmul %28, %29, %cst_19 {dimension_numbers = #tpu.dot_dimension_numbers<[1], [0], [0], [1], [0, 0, 1, 1], [], []>} : vector<32x32xbf16>, vector<32x32xbf16>, vector<32x32xf32> -> vector<32x32xf32>
    %31 = arith.addf %26, %30 : vector<32x32xf32>
    %32 = vector.broadcast %17 : vector<1x32xf32> to vector<32x32xf32>
    %33 = arith.addf %31, %32 : vector<32x32xf32>
    %cst_20 = arith.constant 0.000000e+00 : f32
    %34 = vector.broadcast %cst_20 : f32 to vector<32x32xf32>
    %35 = arith.maximumf %33, %34 : vector<32x32xf32>
    %36 = arith.truncf %35 : vector<32x32xf32> to vector<32x32xbf16>
    %37 = tpu.iota {dimensions = array<i32: 0>} : vector<8x32xi32>
    %38 = tpu.iota {dimensions = array<i32: 1>} : vector<8x32xi32>
    %c2_i32_21 = arith.constant 2 : i32
    %c0_i32 = arith.constant 0 : i32
    %39 = arith.cmpi eq, %c2_i32_21, %c0_i32 : i32
    %c1_i32 = arith.constant 1 : i32
    %40 = arith.select %39, %c1_i32, %c2_i32_21 : i32
    %41 = vector.broadcast %40 : i32 to vector<8x32xi32>
    %42 = arith.remsi %38, %41 : vector<8x32xi32>
    %c0_i32_22 = arith.constant 0 : i32
    %43 = vector.broadcast %c0_i32_22 : i32 to vector<8x32xi32>
    %44 = arith.cmpi ne, %42, %43 : vector<8x32xi32>
    %c0_i32_23 = arith.constant 0 : i32
    %45 = vector.broadcast %c0_i32_23 : i32 to vector<8x32xi32>
    %46 = arith.cmpi slt, %42, %45 : vector<8x32xi32>
    %c0_i32_24 = arith.constant 0 : i32
    %47 = arith.cmpi slt, %40, %c0_i32_24 : i32
    %48 = vector.broadcast %47 : i1 to vector<8x32xi1>
    %49 = vector.broadcast %48 : vector<8x32xi1> to vector<8x32xi1>
    %50 = arith.xori %46, %49 : vector<8x32xi1>
    %51 = arith.andi %50, %44 : vector<8x32xi1>
    %52 = vector.broadcast %40 : i32 to vector<8x32xi32>
    %53 = arith.addi %42, %52 : vector<8x32xi32>
    %54 = arith.select %51, %53, %42 : vector<8x32xi1>, vector<8x32xi32>
    %55 = arith.cmpi eq, %54, %37 : vector<8x32xi32>
    %cst_25 = arith.constant 6.250000e-02 : f32
    %cst_26 = arith.constant 0.000000e+00 : f32
    %56 = vector.broadcast %cst_25 : f32 to vector<8x32xf32>
    %57 = vector.broadcast %cst_26 : f32 to vector<8x32xf32>
    %58 = arith.select %55, %56, %57 : vector<8x32xi1>, vector<8x32xf32>
    %59 = arith.truncf %58 : vector<8x32xf32> to vector<8x32xbf16>
    %cst_27 = arith.constant dense<0.000000e+00> : vector<8x32xf32>
    %60 = tpu.matmul %59, %36, %cst_27 {dimension_numbers = #tpu.dot_dimension_numbers<[1], [0], [0], [1], [0, 0, 1, 1], [], []>} : vector<8x32xbf16>, vector<32x32xbf16>, vector<8x32xf32> -> vector<8x32xf32>
    %61 = arith.truncf %60 : vector<8x32xf32> to vector<8x32xbf16>
    %c0_28 = arith.constant 0 : index
    %c0_29 = arith.constant 0 : index
    %62 = vector.load %arg3[%c0_28, %c0_29] : memref<33x128xbf16, #tpu.memory_space<vmem>>, vector<32x128xbf16>
    %cst_30 = arith.constant dense<0.000000e+00> : vector<8x128xf32>
    %63 = tpu.matmul %61, %62, %cst_30 {dimension_numbers = #tpu.dot_dimension_numbers<[1], [0], [0], [1], [0, 0, 1, 1], [], []>} : vector<8x32xbf16>, vector<32x128xbf16>, vector<8x128xf32> -> vector<8x128xf32>
    %c32 = arith.constant 32 : index
    %c0_31 = arith.constant 0 : index
    %64 = vector.load %arg3[%c32, %c0_31] : memref<33x128xbf16, #tpu.memory_space<vmem>>, vector<1x128xbf16>
    %65 = arith.extf %64 : vector<1x128xbf16> to vector<1x128xf32>
    %66 = vector.broadcast %65 : vector<1x128xf32> to vector<8x128xf32>
    %67 = arith.addf %63, %66 : vector<8x128xf32>
    %c0_32 = arith.constant 0 : index
    %c0_33 = arith.constant 0 : index
    %68 = vector.load %arg4[%c0_32, %c0_33] : memref<8x128xf32, #tpu.memory_space<vmem>>, vector<8x128xf32>
    tpu.vector_store %arg4[%c0_32, %c0_33], %67 {strides = array<i32>} : memref<8x128xf32, #tpu.memory_space<vmem>>, vector<8x128xf32>,
    return
  }
}

</mosaic_0001>

<bundles_post_ra>
// kernel: prixfixe_forward.1
= control target key start
LH: loop header
LB: loop body
LE: loop exit
PB: predicated region body
PF: predicated region fallthrough
CT: control target
= control target key end

     0   :  { %vm58_vm0 = vcmask 1045504   ;;  %v652_v0 = vmov 0.0   ;;  %vm653_vm1 = vmmov 0   ;;  %vm48_vm2 = vcmask 97280   ;;  %s763_s1 = inlined_call_operand.vmem [shape: bf16[112,32], index: 1, kind: input, shape index: {}]   ;;  %s764_s0 = inlined_call_operand.vmem [shape: bf16[36,12], index: 0, kind: input, shape index: {}]   ;;  %s765_s2 = inlined_call_operand.vmem [shape: f32[2,32], index: 2, kind: input, shape index: {}]   ;;  %s766_s3 = inlined_call_operand.vmem [shape: bf16[33,128], index: 3, kind: input, shape index: {}]   ;;  %s767_s4 = inlined_call_operand.vmem [shape: f32[8,128], index: 4, kind: output, shape index: {}]  }
   0x1   :  { %584 = vmatprep.subr.bf16.mxu0 %v652_v0  ;;  %v640_v1 = vld [vmem:[%s763_s1] sm:$0x3f]   ;;  %586 = vmatprep.mubr.msk.bf16.mxu0 %vm653_vm1, %v652_v0  ;;  %v642_v4 = vld [vmem:[%s764_s0 + $0x8] sm:$0xff]   ;;  %v643_v5 = vld [vmem:[%s764_s0 + $0x10] ss:$0 sps:$4 sm:$0x33]   ;;  %v123_v9 = vlaneseq }
   0x2   :  { %v60_v2 = vsel %vm58_vm0, %v640_v1, 0  ;;  %v641_v3 = vld [vmem:[%s764_s0] sm:$0xff]   ;;  %v645_v7 = vld [vmem:[%s763_s1 + $0x18] sm:$0xff]   ;;  %v646_v8 = vld [vmem:[%s763_s1 + $0x10] sm:$0xff]   ;;  %vm149_vm4 = vcmask 261120   ;;  %vm154_vm6 = vcmask 257024  }
   0x3   :  { %585 = vmatpush3.bf16.msra.mxu0 %v60_v2  ;;  %v644_v6 = vld [vmem:[%s763_s1 + $0x20] sm:$0xff]   ;;  %v714_v11 = vshrl.u32 %v123_v9, 7  ;;  %v647_v45 = vld [vmem:[%s763_s1 + $0x8] sm:$0xff]   ;;  %v648_v47 = vld [vmem:[%s763_s1 + $0x30] sm:$0xff]  }
   0x4   :  { %622 = vmatprep.subr.bf16.mxu0 %v652_v0  ;;  %598 = vmatprep.subr.bf16.mxu1 %v644_v6  ;;  %v537_v10 = vld [vmem:[%s765_s2] ss:$0 sm:$0xff]  ;;  %v649_v53 = vld [vmem:[%s763_s1 + $0x28] sm:$0xff]  }
   0x5   :  { %599 = vmatpush3.bf16.msra.mxu1 %v644_v6  ;;  %vm129_vm3 = vcmp.ge.s32.totalorder %v714_v11, 2  ;;  %v128_v28 = vadd.s32 32, %v714_v11  ;;  %v650_v58 = vld [vmem:[%s766_s3 + $0x8] sm:$0xff]  }
   0x6   :  { %587 = vmatmul.mubr.msk.bf16.vlgmr.msra.gmra.mxu0 %vm48_vm2, %v641_v3  ;;  %600 = vmatprep.subr.bf16.mxu1 %v645_v7 }
   0x7   :  { %590 = vmatprep.mubr.msk.bf16.mxu0 %vm653_vm1, %v652_v0  ;;  %vm138_vm5 = vcmp.lt.s32.totalorder %v128_v28, 34 }
   0x9   :  { %601 = vmatpush3.bf16.msra.mxu1 %v645_v7  ;;  %v407_v7 = vand.u32 127, %v123_v9 }
   0xa   :  { %606 = vmatprep.subr.bf16.mxu1 %v646_v8 }
   0xe   :  { %591 = vmatmul.mubr.msk.bf16.gmra.mxu0 %vm48_vm2, %v642_v4 }
   0xf   :  { %594 = vmatprep.mubr.msk.bf16.mxu0 %vm653_vm1, %v652_v0 }
  0x16   :  { %595 = vmatmul.mubr.msk.bf16.gmra.mxu0 %vm48_vm2, %v643_v5 }
  0x17   :  { %626 = vmatprep.mubr.msk.bf16.mxu0 %vm653_vm1, %v652_v0 }
  0xc6   :  { %v96_v12 = vpop.f32.mrf.mxu0 }
  0xc7   :  { %v97_v13 = vadd.f32 %v537_v10, %v96_v12 }
  0xc8   :  { %v588_v14 = vpop.f32.mrf.mxu0 }
  0xc9   :  { %v118_v15 = vmax.f32 %v97_v13, 0.0 }
  0xca   :  { %v99_v16 = vpop.f32.mrf.mxu0 }
  0xcb   :  { %v144_v17 = vsel %vm129_vm3, %v118_v15, 0.0  ;;  %v100_v18 = vadd.f32 %v537_v10, %v99_v16 }
  0xcc   :  { %150 = vst.msk [vmem:[#allocation2] sm:$0xff] %vm149_vm4, %v144_v17  ;;  %v589_v19 = vpop.f32.mrf.mxu0 }
  0xcd   :  { %v119_v20 = vmax.f32 %v100_v18, 0.0  ;;  %v412_v19 = vand.u32 1, %v407_v7 }
  0xce   :  { %v104_v21 = vpop.f32.mrf.mxu0 }
  0xcf   :  { %151 = vst.msk [vmem:[#allocation2 + $0x8] sm:$0xff] %vm149_vm4, %v119_v20  ;;  %v105_v22 = vadd.f32 %v537_v10, %v104_v21  ;;  %vm420_vm7 = vcmp.eq.s32.totalorder %v412_v19, %v714_v11 }
  0xd0   :  { %v592_v23 = vpop.f32.mrf.mxu0 }
  0xd1   :  { %v120_v24 = vmax.f32 %v105_v22, 0.0 }
  0xd2   :  { %v107_v25 = vpop.f32.mrf.mxu0 }
  0xd3   :  { %152 = vst.msk [vmem:[#allocation2 + $0x10] sm:$0xff] %vm149_vm4, %v120_v24  ;;  %v108_v26 = vadd.f32 %v537_v10, %v107_v25  ;;  %v157_v44 = vld [vmem:[#allocation2] sm:$0xff] }
  0xd4   :  { %v593_v27 = vpop.f32.mrf.mxu0 }
  0xd5   :  { %v121_v29 = vmax.f32 %v108_v26, 0.0 }
  0xd6   :  { %v112_v30 = vpop.f32.mrf.mxu0  ;;  %v167_v35 = vld [vmem:[#allocation2 + $0x2] sm:$0xff] }
  0xd7   :  { %153 = vst.msk [vmem:[#allocation2 + $0x18] sm:$0xff] %vm149_vm4, %v121_v29  ;;  %v113_v31 = vadd.f32 %v537_v10, %v112_v30  ;;  %v158_v40 = vld [vmem:[#allocation2 + $0x8] sm:$0xff]  ;;  %v421_v29 = vsel %vm420_vm7, 0.0625, %v652_v0 }
  0xd8   :  { %v596_v32 = vpop.f32.mrf.mxu0  ;;  %v161_v46 = vpack.c.bf16 %v158_v40, %v157_v44  ;;  %v311_v52 = vld [vmem:[#allocation2 + $0x4] sm:$0xff] }
  0xd9   :  { %v122_v33 = vmax.f32 %v113_v31, 0.0  ;;  %v422_v31 = vpack.c.bf16 %v421_v29, %v421_v29  ;;  %v651_v32 = vld [vmem:[%s766_s3] sm:$0xff]  }
  0xda   :  { %v115_v34 = vpop.f32.mrf.mxu0  ;;  %v168_v36 = vld [vmem:[#allocation2 + $0xa] sm:$0xff] }
  0xdb   :  { %v148_v37 = vsel %vm138_vm5, %v122_v33, 0.0  ;;  %v171_v38 = vpack.c.bf16 %v168_v36, %v167_v35  ;;  %v312_v49 = vld [vmem:[#allocation2 + $0xc] sm:$0xff] }
  0xdc   :  { %155 = vst.msk [vmem:[#allocation2 + $0x20] sm:$0xf] %vm154_vm6, %v148_v37  ;;  %v597_v39 = vpop.f32.mrf.mxu0  ;;  %v159_v50 = vld [vmem:[#allocation2 + $0x10] sm:$0xff]  ;;  %v315_v54 = vpack.c.bf16 %v312_v49, %v311_v52 }
  0xdd   :  { %602 = vmatprep.mubr.msk.bf16.mxu1 %vm149_vm4, %v171_v38  ;;  %v475_v39 = vsub.s32 0, %v714_v11 }
  0xde   :  { %v169_v41 = vld [vmem:[#allocation2 + $0x12] sm:$0xff] }
  0xdf   :  { %v160_v48 = vld [vmem:[#allocation2 + $0x18] sm:$0xff] }
  0xe0   :  { %v162_v51 = vpack.c.bf16 %v160_v48, %v159_v50  ;;  %v313_v56 = vld [vmem:[#allocation2 + $0x14] sm:$0xff] }
  0xe3   :  { %v170_v42 = vld [vmem:[#allocation2 + $0x1a] sm:$0xff] }
  0xe4   :  { %v172_v43 = vpack.c.bf16 %v170_v42, %v169_v41  ;;  %v314_v55 = vld [vmem:[#allocation2 + $0x1c] sm:$0xff] }
  0xe5   :  { %v316_v57 = vpack.c.bf16 %v314_v55, %v313_v56 }
  0xe6   :  { %603 = vmatmul.mubr.msk.bf16.vlgmr.msra.gmra.mxu1 %vm149_vm4, %v172_v43 }
  0xe7   :  { %607 = vmatpush3.bf16.msra.mxu1 %v646_v8  ;;  %610 = vmatprep.mubr.msk.bf16.mxu1 %vm149_vm4, %v161_v46  ;;  %v557_v8 = vld [vmem:[%s765_s2 + $0x1] ss:$0 sm:$0xff] }
  0xe8   :  { %608 = vmatprep.subr.bf16.mxu1 %v647_v45 }
  0xeb   :  { %609 = vmatpush3.bf16.msra.mxu1 %v647_v45 }
  0xec   :  { %614 = vmatprep.subr.bf16.mxu1 %v648_v47 }
  0xee   :  { %611 = vmatmul.mubr.msk.bf16.vlgmr.msra.gmra.mxu1 %vm149_vm4, %v162_v51 }
  0xef   :  { %615 = vmatpush3.bf16.msra.mxu1 %v648_v47  ;;  %618 = vmatprep.mubr.msk.bf16.mxu1 %vm149_vm4, %v315_v54 }
  0xf0   :  { %616 = vmatprep.subr.bf16.mxu1 %v649_v53 }
  0xf3   :  { %617 = vmatpush3.bf16.msra.mxu1 %v649_v53 }
  0xf4   :  { %630 = vmatprep.subr.bf16.mxu1 %v652_v0 }
  0xf6   :  { %619 = vmatmul.mubr.msk.bf16.vlgmr.msra.gmra.mxu1 %vm149_vm4, %v316_v57 }
  0xf7   :  { %634 = vmatprep.mubr.msk.bf16.mxu1 %vm653_vm1, %v652_v0  ;;  %631 = vmatpush3.bf16.msra.mxu1 %v650_v58 }
  0xf8   :  { %632 = vmatprep.subr.bf16.mxu1 %v652_v0 }
  0xfb   :  { %633 = vmatpush3.bf16.msra.mxu1 %v651_v32 }
 0x1a6   :  { %v604_v59 = vpop.f32.mrf.mxu1 }
 0x1a8   :  { %v229_v60 = vpop.f32.mrf.mxu1 }
 0x1aa   :  { %v605_v61 = vpop.f32.mrf.mxu1 }
 0x1ac   :  { %v232_v62 = vpop.f32.mrf.mxu1 }
 0x1ae   :  { %v612_v63 = vpop.f32.mrf.mxu1 }
 0x1af   :  { %v305_v4 = vadd.f32 %v612_v63, %v604_v59 }
 0x1b0   :  { %v296_v1 = vpop.f32.mrf.mxu1 }
 0x1b1   :  { %v297_v12 = vadd.f32 %v296_v1, %v229_v60 }
 0x1b2   :  { %v613_v2 = vpop.f32.mrf.mxu1 }
 0x1b3   :  { %v308_v13 = vadd.f32 %v613_v2, %v605_v61 }
 0x1b4   :  { %v299_v3 = vpop.f32.mrf.mxu1 }
 0x1b5   :  { %v300_v15 = vadd.f32 %v299_v3, %v232_v62 }
 0x1b6   :  { %v620_v5 = vpop.f32.mrf.mxu1 }
 0x1b7   :  { %v390_v6 = vadd.f32 %v620_v5, %v305_v4 }
 0x1b8   :  { %v373_v10 = vpop.f32.mrf.mxu1 }
 0x1b9   :  { %v398_v16 = vadd.f32 %v557_v8, %v390_v6  ;;  %v388_v17 = vadd.f32 %v373_v10, %v297_v12 }
 0x1ba   :  { %v621_v14 = vpop.f32.mrf.mxu1 }
 0x1bb   :  { %v391_v18 = vadd.f32 %v621_v14, %v308_v13  ;;  %v402_v23 = vmax.f32 %v398_v16, 0.0  ;;  %v396_v24 = vadd.f32 %v557_v8, %v388_v17 }
 0x1bc   :  { %v376_v20 = vpop.f32.mrf.mxu1 }
 0x1bd   :  { %v399_v21 = vadd.f32 %v557_v8, %v391_v18  ;;  %v389_v22 = vadd.f32 %v376_v20, %v300_v15  ;;  %v400_v28 = vmax.f32 %v396_v24, 0.0 }
 0x1bf   :  { %v403_v25 = vmax.f32 %v399_v21, 0.0  ;;  %v397_v9 = vadd.f32 %v557_v8, %v389_v22 }
 0x1c1   :  { %v405_v26 = vpack.c.bf16 %v403_v25, %v402_v23  ;;  %v401_v27 = vmax.f32 %v397_v9, 0.0 }
 0x1c3   :  { %623 = vmatpush3.bf16.msra.mxu0 %v405_v26  ;;  %v404_v30 = vpack.c.bf16 %v401_v27, %v400_v28 }
 0x1c4   :  { %624 = vmatprep.subr.bf16.mxu0 %v652_v0  ;;  %v471_v0 = vld [vmem:[%s766_s3 + $0x10] sm:$0x1] }
 0x1c5   :  { %v472_v38 = vunpack.c.l.bf16 %v471_v0 }
 0x1c7   :  { %625 = vmatpush3.bf16.msra.mxu0 %v404_v30  ;;  %v476_v40 = vrot.slane %v472_v38, %v475_v39 }
 0x1ca   :  { %627 = vmatmul.mubr.msk.bf16.vlgmr.msra.gmra.mxu0 %vm149_vm4, %v422_v31 }
 0x28a   :  { %v460_v33 = vpop.f32.mrf.mxu0 }
 0x28b   :  { %v466_v34 = vpack.c.bf16 %v460_v33, %v460_v33 }
 0x28c   :  { %v628_v35 = vpop.f32.mrf.mxu0 }
 0x28d   :  { %635 = vmatmul.mubr.msk.bf16.vlgmr.msra.gmra.mxu1 %vm149_vm4, %v466_v34 }
 0x28e   :  { %v463_v36 = vpop.f32.mrf.mxu0 }
 0x290   :  { %v629_v37 = vpop.f32.mrf.mxu0 }
 0x34d   :  { %v526_v41 = vpop.f32.mrf.mxu1 }
 0x34e   :  { %v527_v42 = vadd.f32 %v526_v41, %v476_v40 }
 0x34f   :  { %v636_v43 = vpop.f32.mrf.mxu1 }
 0x350   :  { %532 = vst [vmem:[%s767_s4] sm:$0xff] %v527_v42 }
 0x351   :  { %v529_v44 = vpop.f32.mrf.mxu1 }
 0x353   :  { %v637_v45 = vpop.f32.mrf.mxu1 }

</bundles_post_ra>
